<compile_context>
chip_gen: v7x
topology: tpu7x:2x2x1
jax: 0.10.0
libtpu: 0.0.40
codegen_flags: <defaults>
</compile_context>

<pallas_src>
import functools

import jax
import jax.numpy as jnp
from jax.experimental import pallas as pl
from jax.experimental.pallas import tpu as pltpu

_EPS = 1e-6              # matches PyTorch: diff * diff + self.eps, self.eps = 1e-06
_LANES = 512             # lane-dense minor axis (multiple of 128)
_SUBLANES = 8
_MAX_TILE_ROWS = 2048    # 2048 x 512 x 4 B = 4 MiB per input tile per buffer


def _round_up(a, b):
    return ((a + b - 1) // b) * b


def _charbonnier_kernel(x_ref, y_ref, out_ref, *, eps, tile_rows, full_rows, rem,
                        needs_mask):
    """One independent grid step: per-tile partial sums of sqrt((x-y)^2 + eps).

    x_ref, y_ref : (tile_rows, _LANES) VMEM input tiles
    out_ref      : (_SUBLANES, _LANES) VMEM per-tile partial-sum block
    """
    d = x_ref[...].astype(jnp.float32) - y_ref[...].astype(jnp.float32)
    err = jnp.sqrt(d * d + eps)

    if needs_mask:
        # Zero out wrapper zero-padding and any garbage past the end of the
        # array in a ragged final block (exact: valid iff flat index < n).
        shape = err.shape
        grow = (pl.program_id(0) * tile_rows
                + jax.lax.broadcasted_iota(jnp.int32, shape, 0))
        valid = grow < full_rows
        if rem:
            lane = jax.lax.broadcasted_iota(jnp.int32, shape, 1)
            valid = valid | ((grow == full_rows) & (lane < rem))
        err = jnp.where(valid, err, 0.0)

    # Fold groups of 8 rows with pure VPU adds (sublane-aligned reshape, no
    # cross-lane work).  Final scalar reduction happens in the wrapper.
    out_ref[...] = jnp.sum(
        err.reshape(tile_rows // _SUBLANES, _SUBLANES, _LANES), axis=0)


def l1_charbonnier_loss(x, y, eps=_EPS):
    """Pallas implementation of L1_Charbonnier_loss.forward(x, y) -> scalar."""
    assert x.shape == y.shape
    n = x.size

    group = _SUBLANES * _LANES  # 4096: rows of the 2-D view stay 8-aligned
    if n % group == 0:
        # Fast path: free flat reshape, no padded HBM copy of the inputs.
        rows = n // _LANES
        xp = x.reshape(rows, _LANES)
        yp = y.reshape(rows, _LANES)
    else:
        # Ragged fallback: minimal zero pad (< 4096 elements appended).
        padded = _round_up(n, group)
        rows = padded // _LANES
        xp = jnp.pad(x.reshape(-1), (0, padded - n)).reshape(rows, _LANES)
        yp = jnp.pad(y.reshape(-1), (0, padded - n)).reshape(rows, _LANES)

    tile_rows = min(_MAX_TILE_ROWS, rows)          # multiple of 8 by construction
    num_tiles = (rows + tile_rows - 1) // tile_rows

    full_rows = n // _LANES
    rem = n % _LANES
    needs_mask = (rows * _LANES != n) or (rows % tile_rows != 0)

    kernel = functools.partial(
        _charbonnier_kernel, eps=float(eps), tile_rows=tile_rows,
        full_rows=full_rows, rem=rem, needs_mask=needs_mask)

    partials = pl.pallas_call(
        kernel,
        out_shape=jax.ShapeDtypeStruct((num_tiles * _SUBLANES, _LANES), jnp.float32),
        grid_spec=pltpu.PrefetchScalarGridSpec(
            num_scalar_prefetch=0,
            grid=(num_tiles,),
            in_specs=[
                pl.BlockSpec((tile_rows, _LANES), lambda i: (i, 0)),
                pl.BlockSpec((tile_rows, _LANES), lambda i: (i, 0)),
            ],
            out_specs=pl.BlockSpec((_SUBLANES, _LANES), lambda i: (i, 0)),
        ),
        compiler_params=pltpu.CompilerParams(
            dimension_semantics=("parallel",),      # independent tiles -> megacore OK
            vmem_limit_bytes=32 * 1024 * 1024,      # ~16.5 MiB actually used
        ),
    )(xp, yp)

    # Tiny final reduction over per-tile partials, then torch.mean semantics.
    return jnp.sum(partials) / jnp.float32(n)


def _reference(x, y, eps=_EPS):
    """Pure-JAX reference matching the PyTorch module."""
    d = x - y
    return jnp.mean(jnp.sqrt(d * d + eps))


if __name__ == "__main__":
    key = jax.random.PRNGKey(0)
    k1, k2 = jax.random.split(key)
    B, C, H, W = 2, 4, 16, 16
    x = jax.random.normal(k1, (B, C, H, W), dtype=jnp.float32)
    y = jax.random.normal(k2, (B, C, H, W), dtype=jnp.float32)

    loss = jax.block_until_ready(l1_charbonnier_loss(x, y))
    ref = _reference(x, y)
    assert jnp.allclose(loss, ref, rtol=1e-5, atol=1e-6), (loss, ref)

    print("KERNEL_OK")
</pallas_src>

<mosaic_0001>
module attributes {stable_mosaic.version = 11 : i64} {
  func.func @_charbonnier_kernel(%arg0: i32, %arg1: memref<8x512xf32, #tpu.memory_space<vmem>>, %arg2: memref<8x512xf32, #tpu.memory_space<vmem>>, %arg3: memref<8x512xf32, #tpu.memory_space<vmem>>) attributes {dimension_semantics = [#tpu.dimension_semantics<parallel>], iteration_bounds = array<i64: 1>, scalar_prefetch = 0 : i64, scratch_operands = 0 : i64, tpu.core_type = #tpu.core_type<tc>, window_params = [{transform_indices = @transform_0, window_bounds = array<i64: 8, 512>}, {transform_indices = @transform_1, window_bounds = array<i64: 8, 512>}, {transform_indices = @transform_2, window_bounds = array<i64: 8, 512>}]} {
    %c0 = arith.constant 0 : index
    %c0_0 = arith.constant 0 : index
    %0 = vector.load %arg1[%c0, %c0_0] : memref<8x512xf32, #tpu.memory_space<vmem>>, vector<8x512xf32>
    %c0_1 = arith.constant 0 : index
    %c0_2 = arith.constant 0 : index
    %1 = vector.load %arg2[%c0_1, %c0_2] : memref<8x512xf32, #tpu.memory_space<vmem>>, vector<8x512xf32>
    %2 = arith.subf %0, %1 : vector<8x512xf32>
    %3 = arith.mulf %2, %2 : vector<8x512xf32>
    %cst = arith.constant 9.99999997E-7 : f32
    %4 = vector.broadcast %cst : f32 to vector<8x512xf32>
    %5 = arith.addf %3, %4 : vector<8x512xf32>
    %6 = math.sqrt %5 : vector<8x512xf32>
    %c8_i32 = arith.constant 8 : i32
    %7 = arith.muli %arg0, %c8_i32 : i32
    %8 = tpu.iota {dimensions = array<i32: 0>} : vector<8x512xi32>
    %9 = vector.broadcast %7 : i32 to vector<8x512xi32>
    %10 = arith.addi %9, %8 : vector<8x512xi32>
    %c4_i32 = arith.constant 4 : i32
    %11 = vector.broadcast %c4_i32 : i32 to vector<8x512xi32>
    %12 = arith.cmpi slt, %10, %11 : vector<8x512xi32>
    %cst_3 = arith.constant 0.000000e+00 : f32
    %13 = vector.broadcast %cst_3 : f32 to vector<8x512xf32>
    %14 = arith.select %12, %6, %13 : vector<8x512xi1>, vector<8x512xf32>
    %15 = vector.shape_cast %14 : vector<8x512xf32> to vector<1x8x512xf32>
    %cst_4 = arith.constant dense<0.000000e+00> : vector<8x512xf32>
    %16 = vector.multi_reduction <add>, %15, %cst_4 [0] : vector<1x8x512xf32> to vector<8x512xf32>
    %c0_5 = arith.constant 0 : index
    %c0_6 = arith.constant 0 : index
    %17 = vector.load %arg3[%c0_5, %c0_6] : memref<8x512xf32, #tpu.memory_space<vmem>>, vector<8x512xf32>
    tpu.vector_store %arg3[%c0_5, %c0_6], %16 {strides = array<i32>} : memref<8x512xf32, #tpu.memory_space<vmem>>, vector<8x512xf32>,
    return
  }
  func.func @transform_0(%arg0: i32) -> (i32, i32) {
    %c0_i32 = arith.constant 0 : i32
    %c0_i32_0 = arith.constant 0 : i32
    return %arg0, %c0_i32 : i32, i32
  }
  func.func @transform_1(%arg0: i32) -> (i32, i32) {
    %c0_i32 = arith.constant 0 : i32
    %c0_i32_0 = arith.constant 0 : i32
    return %arg0, %c0_i32 : i32, i32
  }
  func.func @transform_2(%arg0: i32) -> (i32, i32) {
    %c0_i32 = arith.constant 0 : i32
    %c0_i32_0 = arith.constant 0 : i32
    return %arg0, %c0_i32 : i32, i32
  }
}

</mosaic_0001>

<bundles_post_ra>
// kernel: tpu_custom_call.1
= control target key start
LH: loop header
LB: loop body
LE: loop exit
PB: predicated region body
PF: predicated region fallthrough
CT: control target
= control target key end

     0   :  { %7 = vsyncpa [#allocation3], 0  ;;  %s260_s0 = inlined_call_operand.hbm [shape: f32[8,512], index: 0, kind: input, shape index: {}]   ;;  %s261_s1 = inlined_call_operand.hbm [shape: f32[8,512], index: 1, kind: input, shape index: {}]   ;;  %s262_s2 = inlined_call_operand.hbm [shape: f32[8,512], index: 2, kind: output, shape index: {}]  }
   0x1   :  { %8 = vsyncpa [#allocation6], 0 }
   0x2   :  { %9 = vsyncpa [#allocation4], 0  ;;  %s201_s9 = smov [#allocation2]   ;;  %s202_s11 = smov [#allocation5]  }
   0x3   :  { %s16_s10 = sshll.u32 %s201_s9, 4  ;;  %s26_s12 = sshll.u32 %s202_s11, 4  ;;  %s17_s10 = int_to_ptr.vmem [resolvable:$true] %s16_s10  ;;  %s27_s12 = int_to_ptr.vmem [resolvable:$true] %s26_s12 }
   0x4   :  { %s129_s15 = scalar_lea.hbm %s260_s0, 512 }
   0x5   :  { %p130_p0 = scmp.ne.s32.totalorder %s260_s0, %s129_s15  ;;  %p133_p1 = scmp.lt.u32.totalorder %s129_s15, %s260_s0 }
   0x7   :  { %p135_p2 = pnand %p133_p1, %p130_p0 }
   0x9   :  { %138 = shalt.err (!%p135_p2)
}
   0xa   :  { %s139_s20 = scalar_lea.vmem %s17_s10, 512  ;;  %p144_p4 = scmp.lt.s32.totalorder %s17_s10, %s17_s10 }
   0xb   :  { %p140_p3 = scmp.ne.s32.totalorder %s17_s10, %s139_s20  ;;  %p145_p5 = scmp.lt.s32.totalorder %s139_s20, %s139_s20 }
   0xd   :  { %p146_p6 = por %p145_p5, %p144_p4 }
   0xf   :  { %p147_p7 = pnand %p146_p6, %p140_p3 }
  0x11   :  { %150 = shalt.err (!%p147_p7)
}
  0x12   :  { %19 = dma.hbm_to_vmem [thread:$0]  %s260_s0, 512, %s17_s10, [#allocation3]  }
  0x13   :  { %s151_s25 = scalar_lea.hbm %s261_s1, 512 }
  0x14   :  { %p152_p8 = scmp.ne.s32.totalorder %s261_s1, %s151_s25  ;;  %p155_p9 = scmp.lt.u32.totalorder %s151_s25, %s261_s1 }
  0x16   :  { %p157_p10 = pnand %p155_p9, %p152_p8 }
  0x18   :  { %160 = shalt.err (!%p157_p10)
}
  0x19   :  { %s161_s30 = scalar_lea.vmem %s27_s12, 512  ;;  %p166_p12 = scmp.lt.s32.totalorder %s27_s12, %s27_s12 }
  0x1a   :  { %p162_p11 = scmp.ne.s32.totalorder %s27_s12, %s161_s30  ;;  %p167_p13 = scmp.lt.s32.totalorder %s161_s30, %s161_s30 }
  0x1c   :  { %p168_p0 = por %p167_p13, %p166_p12 }
  0x1e   :  { %p169_p1 = pnand %p168_p0, %p162_p11 }
  0x20   :  { %172 = shalt.err (!%p169_p1)
}
  0x21   :  { %29 = dma.hbm_to_vmem [thread:$0]  %s261_s1, 512, %s27_s12, [#allocation6]  }
  0x22   :  { %195 = dma.done.wait [#allocation3], 512  }
  0x23   :  { %196 = vsyncadd [#allocation3], 4294966784 }
  0x24   :  { %197 = dma.done.wait [#allocation6], 512  }
  0x25   :  { %198 = vsyncadd [#allocation6], 4294966784  ;;  %v36_v0 = vld [vmem:[#allocation2] sm:$0xff]  ;;  %v37_v2 = vld [vmem:[#allocation2 + $0x8] sm:$0xff]  ;;  %v85_v19 = vlaneseq  ;;  %s203_s1 = smov [#allocation7]  }
  0x26   :  { %v40_v1 = vld [vmem:[#allocation5] sm:$0xff]  ;;  %v41_v4 = vld [vmem:[#allocation5 + $0x8] sm:$0xff]  ;;  %v38_v5 = vld [vmem:[#allocation2 + $0x10] sm:$0xff]  ;;  %s108_s4 = sshll.u32 %s203_s1, 4  ;;  %s109_s4 = int_to_ptr.vmem [resolvable:$true] %s108_s4 }
  0x27   :  { %v44_v3 = vsub.f32 %v36_v0, %v40_v1  ;;  %v42_v6 = vld [vmem:[#allocation5 + $0x10] sm:$0xff]  ;;  %v45_v7 = vsub.f32 %v37_v2, %v41_v4  ;;  %v39_v9 = vld [vmem:[#allocation2 + $0x18] sm:$0xff]  ;;  %v86_v21 = vshrl.u32 %v85_v19, 7  ;;  %s173_s5 = scalar_lea.vmem %s109_s4, 512  ;;  %p178_p3 = scmp.lt.s32.totalorder %s109_s4, %s109_s4 }
  0x28   :  { %v46_v8 = vsub.f32 %v38_v5, %v42_v6  ;;  %v43_v10 = vld [vmem:[#allocation5 + $0x18] sm:$0xff]  ;;  %p174_p2 = scmp.ne.s32.totalorder %s109_s4, %s173_s5  ;;  %p179_p4 = scmp.lt.s32.totalorder %s173_s5, %s173_s5 }
  0x29   :  { %v48_v11 = vmul.f32 %v44_v3, %v44_v3  ;;  %v47_v12 = vsub.f32 %v39_v9, %v43_v10  ;;  %v49_v13 = vmul.f32 %v45_v7, %v45_v7  ;;  %vm89_vm1 = vcmp.lt.s32.totalorder %v86_v21, 4 }
  0x2a   :  { %v50_v14 = vmul.f32 %v46_v8, %v46_v8  ;;  %p180_p5 = por %p179_p4, %p178_p3 }
  0x2b   :  { %v52_v15 = vadd.f32 1e-06, %v48_v11  ;;  %v53_v16 = vadd.f32 1e-06, %v49_v13  ;;  %v51_v18 = vmul.f32 %v47_v12, %v47_v12 }
  0x2c   :  { %v54_v17 = vadd.f32 1e-06, %v50_v14  ;;  %p181_p6 = pnand %p180_p5, %p174_p2 }
  0x2d   :  { %121 = vrsqrt.f32 %v52_v15  ;;  %v55_v20 = vadd.f32 1e-06, %v51_v18  ;;  %vm58_vm0 = vcmp.eq.f32.partialorder %v52_v15, inf  ;;  %v61_v23 = vand.u32 2147483648, %v52_v15 }
  0x2e   :  { %123 = vrsqrt.f32 %v53_v16  ;;  %vm60_vm2 = vcmp.eq.f32.partialorder %v52_v15, 0.0  ;;  %vm65_vm3 = vcmp.eq.f32.partialorder %v53_v16, inf  ;;  %v68_v26 = vand.u32 2147483648, %v53_v16 }
  0x2f   :  { %125 = vrsqrt.f32 %v54_v17  ;;  %vm67_vm4 = vcmp.eq.f32.partialorder %v53_v16, 0.0  ;;  %vm72_vm5 = vcmp.eq.f32.partialorder %v54_v17, inf  ;;  %v75_v29 = vand.u32 2147483648, %v54_v17 }
  0x30   :  { %127 = vrsqrt.f32 %v55_v20  ;;  %vm74_vm6 = vcmp.eq.f32.partialorder %v54_v17, 0.0  ;;  %vm79_vm7 = vcmp.eq.f32.partialorder %v55_v20, inf  ;;  %v82_v38 = vand.u32 2147483648, %v55_v20 }
  0x31   :  { %vm81_vm8 = vcmp.eq.f32.partialorder %v55_v20, 0.0 }
  0x37   :  { %v122_v22 = vpop.eup %121 }
  0x38   :  { %v124_v24 = vpop.eup %123  ;;  %v57_v25 = vmul.f32 %v122_v22, %v52_v15 }
  0x39   :  { %v126_v27 = vpop.eup %125  ;;  %v64_v28 = vmul.f32 %v124_v24, %v53_v16 }
  0x3a   :  { %v59_v30 = vsel %vm58_vm0, %v52_v15, %v57_v25  ;;  %v71_v31 = vmul.f32 %v126_v27, %v54_v17  ;;  %v128_v34 = vpop.eup %127 }
  0x3b   :  { %v62_v32 = vsel %vm60_vm2, %v61_v23, %v59_v30  ;;  %v66_v33 = vsel %vm65_vm3, %v53_v16, %v64_v28  ;;  %v78_v41 = vmul.f32 %v128_v34, %v55_v20 }
  0x3c   :  { %v90_v35 = vsel %vm89_vm1, %v62_v32, 0.0  ;;  %v69_v36 = vsel %vm67_vm4, %v68_v26, %v66_v33  ;;  %v73_v37 = vsel %vm72_vm5, %v54_v17, %v71_v31 }
  0x3d   :  { %98 = vst [vmem:[#allocation7] sm:$0xff] %v90_v35  ;;  %v91_v39 = vsel %vm89_vm1, %v69_v36, 0.0  ;;  %v76_v40 = vsel %vm74_vm6, %v75_v29, %v73_v37  ;;  %v80_v43 = vsel %vm79_vm7, %v55_v20, %v78_v41 }
  0x3e   :  { %99 = vst [vmem:[#allocation7 + $0x8] sm:$0xff] %v91_v39  ;;  %v92_v42 = vsel %vm89_vm1, %v76_v40, 0.0  ;;  %v83_v44 = vsel %vm81_vm8, %v82_v38, %v80_v43 }
  0x3f   :  { %100 = vst [vmem:[#allocation7 + $0x10] sm:$0xff] %v92_v42  ;;  %v93_v45 = vsel %vm89_vm1, %v83_v44, 0.0 }
  0x40   :  { %101 = vst [vmem:[#allocation7 + $0x18] sm:$0xff] %v93_v45 }
  0x41   :  { %184 = shalt.err (!%p181_p6)
}
  0x42   :  { %s185_s8 = scalar_lea.hbm %s262_s2, 512 }
  0x43   :  { %p186_p7 = scmp.ne.s32.totalorder %s262_s2, %s185_s8  ;;  %p189_p8 = scmp.lt.u32.totalorder %s185_s8, %s262_s2 }
  0x45   :  { %p191_p9 = pnand %p189_p8, %p186_p7 }
  0x47   :  { %194 = shalt.err (!%p191_p9)
}
  0x48   :  { %111 = dma.vmem_to_hbm [thread:$0]  %s109_s4, 512, %s262_s2, [#allocation4]  }
  0x49   :  { %199 = dma.done.wait [#allocation4], 512  }
  0x4a   :  { %200 = vsyncadd [#allocation4], 4294966784 }
  0x4b   :  { %115 = vsyncpa [#allocation3], 1 }
  0x4c   :  { %116 = vsyncpa [#allocation6], 1 }
  0x4d   :  { %117 = vsyncpa [#allocation4], 1 }

</bundles_post_ra>
